<compile_context>
chip_gen: v7x
topology: tpu7x:2x2x1
jax: 0.10.0
libtpu: 0.0.40
codegen_flags: <defaults>
</compile_context>

<pallas_src>
import functools

import jax
import jax.numpy as jnp
from jax.experimental import pallas as pl
from jax.experimental.pallas import tpu as pltpu

_LANE = 128     # vreg lane width: keep last dims multiples of this
_SUBLANE = 8    # vreg sublane width: batch-tile granularity


def _round_up(n: int, m: int) -> int:
    return ((n + m - 1) // m) * m


def adapter_kernel(x_ref, w1_ref, w2_ref, o_ref):
    """One batch tile: o = relu(relu(x @ w1) @ w2), accumulated in f32."""
    h = jnp.dot(x_ref[...], w1_ref[...], preferred_element_type=jnp.float32)
    h = jnp.maximum(h, 0.0)
    y = jnp.dot(h.astype(w2_ref.dtype), w2_ref[...],
                preferred_element_type=jnp.float32)
    o_ref[...] = jnp.maximum(y, 0.0).astype(o_ref.dtype)


@functools.partial(jax.jit, static_argnames=("block_b", "compute_dtype"))
def adapter_forward(x, w1, w2, *, block_b=512, compute_dtype=jnp.bfloat16):
    """x: [B, C], w1: [C, H], w2: [H, C] -> relu(relu(x @ w1) @ w2): [B, C]."""
    B, C = x.shape
    C_w, H = w1.shape
    assert C_w == C and w2.shape == (H, C)
    out_dtype = x.dtype
    cd = jnp.dtype(compute_dtype)

    # Lane-dense padding of the feature dims (exact: ReLU(0) == 0,
    # zero-padded channels contribute nothing and are sliced off).
    Cp = _round_up(C, _LANE)
    Hp = _round_up(H, _LANE)

    # Batch tiling: one grid step per batch tile, weights stay VMEM-resident.
    tb = min(block_b, _round_up(B, _SUBLANE))
    Bp = _round_up(B, tb)

    xp = jnp.zeros((Bp, Cp), cd).at[:B, :C].set(x.astype(cd))
    w1p = jnp.zeros((Cp, Hp), cd).at[:C, :H].set(w1.astype(cd))
    w2p = jnp.zeros((Hp, Cp), cd).at[:H, :C].set(w2.astype(cd))

    cost = pl.CostEstimate(
        flops=2 * Bp * Cp * Hp * 2,                 # two B x C x H matmuls
        transcendentals=0,
        bytes_accessed=(xp.size + w1p.size + w2p.size) * cd.itemsize
        + Bp * Cp * jnp.dtype(out_dtype).itemsize,
    )

    out = pl.pallas_call(
        adapter_kernel,
        out_shape=jax.ShapeDtypeStruct((Bp, Cp), out_dtype),
        grid_spec=pl.GridSpec(
            grid=(Bp // tb,),
            in_specs=[
                pl.BlockSpec((tb, Cp), lambda i: (i, 0)),   # x: batch-tiled
                pl.BlockSpec((Cp, Hp), lambda i: (0, 0)),   # w1: resident
                pl.BlockSpec((Hp, Cp), lambda i: (0, 0)),   # w2: resident
            ],
            out_specs=pl.BlockSpec((tb, Cp), lambda i: (i, 0)),
        ),
        compiler_params=pltpu.CompilerParams(
            dimension_semantics=("parallel",),     # megacore-shard the batch
            vmem_limit_bytes=32 * 1024 * 1024,     # safe on v5e/v6e/v7x
        ),
        cost_estimate=cost,
    )(xp, w1p, w2p)

    return out[:B, :C]


if __name__ == "__main__":
    # Small shapes consistent with the module: c_in=128, reduction=4 -> hidden=32.
    B, C_IN, REDUCTION = 64, 128, 4
    C_HID = C_IN // REDUCTION

    key = jax.random.PRNGKey(0)
    kx, kw1, kw2 = jax.random.split(key, 3)

    x = jax.random.normal(kx, (B, C_IN), dtype=jnp.float32)

    # PyTorch Linear default init bound = 1/sqrt(fan_in); stored transposed.
    bound1 = 1.0 / (C_IN ** 0.5)
    bound2 = 1.0 / (C_HID ** 0.5)
    w1 = jax.random.uniform(kw1, (C_IN, C_HID), jnp.float32, -bound1, bound1)
    w2 = jax.random.uniform(kw2, (C_HID, C_IN), jnp.float32, -bound2, bound2)

    out = adapter_forward(x, w1, w2)
    out = jax.block_until_ready(out)

    # Pure-JAX f32 reference; loose tolerance accounts for bf16 MXU inputs.
    ref = jnp.maximum(jnp.maximum(x @ w1, 0.0) @ w2, 0.0)
    assert out.shape == (B, C_IN)
    assert out.dtype == x.dtype
    assert jnp.allclose(out, ref, atol=2e-2, rtol=2e-2), float(
        jnp.max(jnp.abs(out - ref)))

    print("KERNEL_OK")
</pallas_src>

<mosaic_0001>
module attributes {stable_mosaic.version = 11 : i64} {
  func.func @adapter_kernel(%arg0: i32, %arg1: memref<64x128xbf16, #tpu.memory_space<vmem>>, %arg2: memref<128x128xbf16, #tpu.memory_space<vmem>>, %arg3: memref<128x128xbf16, #tpu.memory_space<vmem>>, %arg4: memref<64x128xf32, #tpu.memory_space<vmem>>) attributes {dimension_semantics = [#tpu.dimension_semantics<parallel>], iteration_bounds = array<i64: 1>, scalar_prefetch = 0 : i64, scratch_operands = 0 : i64, tpu.core_type = #tpu.core_type<tc>, window_params = [{transform_indices = @transform_0, window_bounds = array<i64: 64, 128>}, {pipeline_mode = #tpu.pipeline_mode<synchronous>, transform_indices = @transform_1, window_bounds = array<i64: 128, 128>}, {pipeline_mode = #tpu.pipeline_mode<synchronous>, transform_indices = @transform_2, window_bounds = array<i64: 128, 128>}, {transform_indices = @transform_3, window_bounds = array<i64: 64, 128>}]} {
    %c0 = arith.constant 0 : index
    %c0_0 = arith.constant 0 : index
    %0 = vector.load %arg1[%c0, %c0_0] : memref<64x128xbf16, #tpu.memory_space<vmem>>, vector<64x128xbf16>
    %c0_1 = arith.constant 0 : index
    %c0_2 = arith.constant 0 : index
    %1 = vector.load %arg2[%c0_1, %c0_2] : memref<128x128xbf16, #tpu.memory_space<vmem>>, vector<128x128xbf16>
    %cst = arith.constant dense<0.000000e+00> : vector<64x128xf32>
    %2 = tpu.matmul %0, %1, %cst {dimension_numbers = #tpu.dot_dimension_numbers<[1], [0], [0], [1], [0, 0, 1, 1], [], []>} : vector<64x128xbf16>, vector<128x128xbf16>, vector<64x128xf32> -> vector<64x128xf32>
    %cst_3 = arith.constant 0.000000e+00 : f32
    %3 = vector.broadcast %cst_3 : f32 to vector<64x128xf32>
    %4 = arith.maximumf %2, %3 : vector<64x128xf32>
    %5 = arith.truncf %4 : vector<64x128xf32> to vector<64x128xbf16>
    %c0_4 = arith.constant 0 : index
    %c0_5 = arith.constant 0 : index
    %6 = vector.load %arg3[%c0_4, %c0_5] : memref<128x128xbf16, #tpu.memory_space<vmem>>, vector<128x128xbf16>
    %cst_6 = arith.constant dense<0.000000e+00> : vector<64x128xf32>
    %7 = tpu.matmul %5, %6, %cst_6 {dimension_numbers = #tpu.dot_dimension_numbers<[1], [0], [0], [1], [0, 0, 1, 1], [], []>} : vector<64x128xbf16>, vector<128x128xbf16>, vector<64x128xf32> -> vector<64x128xf32>
    %cst_7 = arith.constant 0.000000e+00 : f32
    %8 = vector.broadcast %cst_7 : f32 to vector<64x128xf32>
    %9 = arith.maximumf %7, %8 : vector<64x128xf32>
    %c0_8 = arith.constant 0 : index
    %c0_9 = arith.constant 0 : index
    %10 = vector.load %arg4[%c0_8, %c0_9] : memref<64x128xf32, #tpu.memory_space<vmem>>, vector<64x128xf32>
    tpu.vector_store %arg4[%c0_8, %c0_9], %9 {strides = array<i32>} : memref<64x128xf32, #tpu.memory_space<vmem>>, vector<64x128xf32>,
    return
  }
  func.func @transform_0(%arg0: i32) -> (i32, i32) {
    %c0_i32 = arith.constant 0 : i32
    %c0_i32_0 = arith.constant 0 : i32
    return %arg0, %c0_i32 : i32, i32
  }
  func.func @transform_1(%arg0: i32) -> (i32, i32) {
    %c0_i32 = arith.constant 0 : i32
    %c0_i32_0 = arith.constant 0 : i32
    %c0_i32_1 = arith.constant 0 : i32
    return %c0_i32, %c0_i32_0 : i32, i32
  }
  func.func @transform_2(%arg0: i32) -> (i32, i32) {
    %c0_i32 = arith.constant 0 : i32
    %c0_i32_0 = arith.constant 0 : i32
    %c0_i32_1 = arith.constant 0 : i32
    return %c0_i32, %c0_i32_0 : i32, i32
  }
  func.func @transform_3(%arg0: i32) -> (i32, i32) {
    %c0_i32 = arith.constant 0 : i32
    %c0_i32_0 = arith.constant 0 : i32
    return %arg0, %c0_i32 : i32, i32
  }
}

</mosaic_0001>

<bundles_post_ra>
// kernel: adapter_forward.1
= control target key start
LH: loop header
LB: loop body
LE: loop exit
PB: predicated region body
PF: predicated region fallthrough
CT: control target
= control target key end

     0   :  { %s584_s0 = inlined_call_operand.vmem [shape: bf16[64,128], index: 0, kind: input, shape index: {}]   ;;  %s585_s1 = inlined_call_operand.vmem [shape: bf16[128,128], index: 1, kind: input, shape index: {}]   ;;  %s586_s2 = inlined_call_operand.vmem [shape: bf16[128,128], index: 2, kind: input, shape index: {}]   ;;  %s587_s3 = inlined_call_operand.hbm [shape: f32[64,128], index: 3, kind: output, shape index: {}]  }
   0x1   :  { %v445_v0 = vld [vmem:[%s585_s1] sm:$0xff]   ;;  %v446_v1 = vld [vmem:[%s585_s1 + $0x8] sm:$0xff]   ;;  %v447_v2 = vld [vmem:[%s585_s1 + $0x10] sm:$0xff]  }
   0x2   :  { %394 = vmatprep.subr.bf16.mxu0 %v445_v0  ;;  %v448_v3 = vld [vmem:[%s585_s1 + $0x18] sm:$0xff]   ;;  %v453_v4 = vld [vmem:[%s584_s0] sm:$0xff]   ;;  %v458_v7 = vld [vmem:[%s586_s2 + $0x8] sm:$0xff]  }
   0x3   :  { %395 = vmatpush3.bf16.msra.mxu0 %v445_v0  ;;  %410 = vmatprep.mubr.bf16.mxu0 %v453_v4  ;;  %v449_v5 = vld [vmem:[%s585_s1 + $0x20] sm:$0xff]   ;;  %v450_v8 = vld [vmem:[%s585_s1 + $0x28] sm:$0xff]   ;;  %v459_v9 = vld [vmem:[%s586_s2 + $0x10] sm:$0xff]  }
   0x4   :  { %396 = vmatprep.subr.bf16.mxu0 %v446_v1  ;;  %v457_v6 = vld [vmem:[%s586_s2] sm:$0xff]  }
   0x5   :  { %418 = vmatprep.subr.bf16.mxu1 %v457_v6 }
   0x6   :  { %419 = vmatpush3.bf16.msra.mxu1 %v457_v6 }
   0x7   :  { %397 = vmatpush3.bf16.msra.mxu0 %v446_v1  ;;  %420 = vmatprep.subr.bf16.mxu1 %v458_v7 }
   0x8   :  { %398 = vmatprep.subr.bf16.mxu0 %v447_v2 }
   0xa   :  { %421 = vmatpush3.bf16.msra.mxu1 %v458_v7 }
   0xb   :  { %399 = vmatpush3.bf16.msra.mxu0 %v447_v2 }
   0xc   :  { %400 = vmatprep.subr.bf16.mxu0 %v448_v3 }
   0xf   :  { %401 = vmatpush3.bf16.msra.mxu0 %v448_v3 }
  0x10   :  { %402 = vmatprep.subr.bf16.mxu0 %v449_v5 }
  0x13   :  { %403 = vmatpush3.bf16.msra.mxu0 %v449_v5 }
  0x14   :  { %8 = vsyncpa [#allocation3], 0  ;;  %404 = vmatprep.subr.bf16.mxu0 %v450_v8  ;;  %v451_v10 = vld [vmem:[%s585_s1 + $0x30] sm:$0xff]   ;;  %422 = vmatprep.subr.bf16.mxu1 %v459_v9  ;;  %v460_v11 = vld [vmem:[%s586_s2 + $0x18] sm:$0xff]  }
  0x15   :  { %423 = vmatpush3.bf16.msra.mxu1 %v459_v9  ;;  %v452_v12 = vld [vmem:[%s585_s1 + $0x38] sm:$0xff]   ;;  %v461_v13 = vld [vmem:[%s586_s2 + $0x20] sm:$0xff]   ;;  %v462_v14 = vld [vmem:[%s586_s2 + $0x28] sm:$0xff]  }
  0x16   :  { %424 = vmatprep.subr.bf16.mxu1 %v460_v11  ;;  %v454_v15 = vld [vmem:[%s584_s0 + $0x8] sm:$0xff]   ;;  %v455_v16 = vld [vmem:[%s584_s0 + $0x10] sm:$0xff]   ;;  %v456_v17 = vld [vmem:[%s584_s0 + $0x18] sm:$0xff]   ;;  %s489_s0 = smov [#allocation2]  }
  0x17   :  { %405 = vmatpush3.bf16.msra.mxu0 %v450_v8  ;;  %v463_v18 = vld [vmem:[%s586_s2 + $0x30] sm:$0xff]   ;;  %v464_v19 = vld [vmem:[%s586_s2 + $0x38] sm:$0xff]   ;;  %s339_s2 = sshll.u32 %s489_s0, 4  ;;  %s340_s2 = int_to_ptr.vmem [resolvable:$true] %s339_s2 }
  0x18   :  { %406 = vmatprep.subr.bf16.mxu0 %v451_v10  ;;  %s465_s24 = scalar_lea.vmem %s340_s2, 1024  ;;  %p470_p1 = scmp.lt.s32.totalorder %s340_s2, %s340_s2 }
  0x19   :  { %425 = vmatpush3.bf16.msra.mxu1 %v460_v11  ;;  %p466_p0 = scmp.ne.s32.totalorder %s340_s2, %s465_s24  ;;  %p471_p2 = scmp.lt.s32.totalorder %s465_s24, %s465_s24 }
  0x1a   :  { %426 = vmatprep.subr.bf16.mxu1 %v461_v13 }
  0x1b   :  { %407 = vmatpush3.bf16.msra.mxu0 %v451_v10  ;;  %p472_p3 = por %p471_p2, %p470_p1 }
  0x1c   :  { %408 = vmatprep.subr.bf16.mxu0 %v452_v12 }
  0x1d   :  { %427 = vmatpush3.bf16.msra.mxu1 %v461_v13  ;;  %p473_p4 = pnand %p472_p3, %p466_p0 }
  0x1e   :  { %428 = vmatprep.subr.bf16.mxu1 %v462_v14 }
  0x1f   :  { %409 = vmatpush3.bf16.msra.mxu0 %v452_v12 }
  0x21   :  { %429 = vmatpush3.bf16.msra.mxu1 %v462_v14 }
  0x22   :  { %411 = vmatmul.mubr.bf16.vlgmr.msra.gmra.mrb[0].mxu0 %v454_v15  ;;  %430 = vmatprep.subr.bf16.mxu1 %v463_v18 }
  0x23   :  { %414 = vmatprep.mubr.bf16.mxu0 %v455_v16 }
  0x25   :  { %431 = vmatpush3.bf16.msra.mxu1 %v463_v18 }
  0x26   :  { %432 = vmatprep.subr.bf16.mxu1 %v464_v19 }
  0x29   :  { %433 = vmatpush3.bf16.msra.mxu1 %v464_v19 }
  0x2a   :  { %415 = vmatmul.mubr.bf16.gmra.mrb[4].mxu0 %v456_v17 }
  0xf5   :  { %v412_v20 = vpop.f32.mrb[0].mxu0 }
  0xf6   :  { %v146_v21 = vpop.f32.mrb[1].mxu0  ;;  %v179_v23 = vmax.f32 %v412_v20, 0.0 }
  0xf7   :  { %v413_v22 = vpop.f32.mrb[2].mxu0  ;;  %v177_v26 = vmax.f32 %v146_v21, 0.0 }
  0xf8   :  { %v180_v24 = vmax.f32 %v413_v22, 0.0  ;;  %v149_v25 = vpop.f32.mrb[3].mxu0 }
  0xf9   :  { %v178_v27 = vmax.f32 %v149_v25, 0.0 }
  0xfa   :  { %v186_v28 = vpack.c.bf16 %v180_v24, %v179_v23 }
  0xfb   :  { %v185_v29 = vpack.c.bf16 %v178_v27, %v177_v26 }
  0xfd   :  { %v416_v30 = vpop.f32.mrb[4].mxu0  ;;  %434 = vmatprep.mubr.bf16.mxu1 %v185_v29 }
  0xfe   :  { %v162_v31 = vpop.f32.mrb[5].mxu0  ;;  %435 = vmatmul.mubr.bf16.vlgmr.msra.gmra.mrb[0].mxu1 %v186_v28  ;;  %v183_v33 = vmax.f32 %v416_v30, 0.0 }
  0xff   :  { %v417_v32 = vpop.f32.mrb[6].mxu0  ;;  %v181_v36 = vmax.f32 %v162_v31, 0.0 }
 0x100   :  { %v184_v34 = vmax.f32 %v417_v32, 0.0  ;;  %v165_v35 = vpop.f32.mrb[7].mxu0 }
 0x101   :  { %v182_v37 = vmax.f32 %v165_v35, 0.0 }
 0x102   :  { %v188_v38 = vpack.c.bf16 %v184_v34, %v183_v33 }
 0x103   :  { %v187_v39 = vpack.c.bf16 %v182_v37, %v181_v36 }
 0x105   :  { %438 = vmatprep.mubr.bf16.mxu1 %v187_v39 }
 0x106   :  { %439 = vmatmul.mubr.bf16.gmra.mrb[4].mxu1 %v188_v38 }
 0x1d1   :  { %v436_v40 = vpop.f32.mrb[0].mxu1 }
 0x1d2   :  { %v320_v41 = vmax.f32 %v436_v40, 0.0  ;;  %v287_v42 = vpop.f32.mrb[1].mxu1 }
 0x1d3   :  { %v318_v43 = vmax.f32 %v287_v42, 0.0  ;;  %v437_v44 = vpop.f32.mrb[2].mxu1 }
 0x1d4   :  { %328 = vst [vmem:[#allocation2 + $0x10] sm:$0xff] %v320_v41  ;;  %v321_v45 = vmax.f32 %v437_v44, 0.0  ;;  %v290_v46 = vpop.f32.mrb[3].mxu1 }
 0x1d5   :  { %326 = vst [vmem:[#allocation2] sm:$0xff] %v318_v43  ;;  %v319_v47 = vmax.f32 %v290_v46, 0.0 }
 0x1d6   :  { %329 = vst [vmem:[#allocation2 + $0x18] sm:$0xff] %v321_v45 }
 0x1d7   :  { %327 = vst [vmem:[#allocation2 + $0x8] sm:$0xff] %v319_v47 }
 0x1d9   :  { %v440_v48 = vpop.f32.mrb[4].mxu1 }
 0x1da   :  { %v324_v49 = vmax.f32 %v440_v48, 0.0  ;;  %v303_v50 = vpop.f32.mrb[5].mxu1 }
 0x1db   :  { %v322_v51 = vmax.f32 %v303_v50, 0.0  ;;  %v441_v52 = vpop.f32.mrb[6].mxu1 }
 0x1dc   :  { %332 = vst [vmem:[#allocation2 + $0x30] sm:$0xff] %v324_v49  ;;  %v325_v53 = vmax.f32 %v441_v52, 0.0  ;;  %v306_v54 = vpop.f32.mrb[7].mxu1 }
 0x1dd   :  { %330 = vst [vmem:[#allocation2 + $0x20] sm:$0xff] %v322_v51  ;;  %v323_v55 = vmax.f32 %v306_v54, 0.0 }
 0x1de   :  { %333 = vst [vmem:[#allocation2 + $0x38] sm:$0xff] %v325_v53 }
 0x1df   :  { %331 = vst [vmem:[#allocation2 + $0x28] sm:$0xff] %v323_v55 }
 0x1e0   :  { %476 = shalt.err (!%p473_p4)
}
 0x1e1   :  { %s477_s27 = scalar_lea.hbm %s587_s3, 1024 }
 0x1e2   :  { %p478_p5 = scmp.ne.s32.totalorder %s587_s3, %s477_s27  ;;  %p481_p6 = scmp.lt.u32.totalorder %s477_s27, %s587_s3 }
 0x1e4   :  { %p483_p7 = pnand %p481_p6, %p478_p5 }
 0x1e6   :  { %486 = shalt.err (!%p483_p7)
}
 0x1e7   :  { %s490_s5 = smov 128   ;;  %s491_s6 = smov 8  }
 0x1e8   :  { %345 = dma.vmem_to_hbm [thread:$0]  %s340_s2, 1024, %s587_s3, [#allocation3], %s490_s5, %s490_s5, %s491_s6  }
 0x1e9   :  { %487 = dma.done.wait [#allocation3], 1024  }
 0x1ea   :  { %488 = vsyncadd [#allocation3], 4294966272 }
 0x1eb   :  { %349 = vsyncpa [#allocation3], 1 }

</bundles_post_ra>
